<compile_context>
chip_gen: v7x
topology: tpu7x:2x2x1
jax: 0.10.0
libtpu: 0.0.40
codegen_flags: <defaults>
</compile_context>

<pallas_src>
import functools

import jax
import jax.numpy as jnp
import numpy as np
from jax.experimental import pallas as pl
from jax.experimental.pallas import tpu as pltpu

CONFIG = dict(
    emb_dims=32,
    emb_layers=2,
    num_heads=4,
    hid_dim=16,
    scaling_factor=0.25,
    dropout=0.0,
)
FEAT_DIM = 32
LN_EPS = 1e-5


def _round_up(a, m):
    return (a + m - 1) // m * m


# --------------------------------------------------------------------------------------
# Kernel: processes TB bags per grid step, all heads at once, lane-dense slabs only.
# --------------------------------------------------------------------------------------
def _hopfield_mil_kernel(TB, N, F, E, nh, hd, approx_recip,
                         x_ref, w0t_ref, w1t_ref, wkv_ref, wot_ref, exp_ref, vec_ref,
                         out_ref):
    KV = nh * hd
    CW = nh + KV                      # packed [scores | values] width
    rows = TB * N
    mm_dtype = w0t_ref.dtype          # bf16 fast path / f32 exact path

    x = x_ref[...].reshape(rows, F)

    vec = vec_ref[...]                # (6, VW) packed f32 row vectors
    b0 = vec[0:1, :E]
    b1 = vec[1:2, :E]
    bkv = vec[2:3, :CW]
    bo = vec[3:4, :E]
    wc = vec[4:5, :E]
    bc = vec[5:6, 0:1]

    # Embedding MLP (emb_layers = 2): matmuls in mm_dtype, f32 accumulation / elementwise.
    h = jnp.dot(x.astype(mm_dtype), w0t_ref[...],
                preferred_element_type=jnp.float32) + b0
    h = jnp.maximum(h, 0.0)
    h = jnp.dot(h.astype(mm_dtype), w1t_ref[...],
                preferred_element_type=jnp.float32) + b1
    h = jnp.maximum(h, 0.0)                                              # (rows, E) f32

    # Shared LayerNorm normalization (stored/proj affines folded into wkv/bkv), f32.
    mu = jnp.mean(h, axis=-1, keepdims=True)
    var = jnp.mean(jnp.square(h - mu), axis=-1, keepdims=True)
    z = (h - mu) * jax.lax.rsqrt(var + LN_EPS)                           # (rows, E)

    # Fused [scores | values] slab: scaling * q, LN affines already folded into wkv/bkv.
    kv = jnp.dot(z.astype(mm_dtype), wkv_ref[...],
                 preferred_element_type=jnp.float32) + bkv               # (rows, CW)

    # Softmax over the stored-pattern axis N, per (bag, head), on the small score block.
    s3 = kv[:, :nh].reshape(TB, N, nh)
    s3 = s3 - jnp.max(s3, axis=1, keepdims=True)
    p3 = jnp.exp(s3)                                                     # (TB, N, nh)
    denom = jnp.sum(p3, axis=1)                                          # (TB, nh)

    # Broadcast per-head probabilities across the value columns with a constant 0/1
    # expansion matmul (score columns get weight 0), keeping everything lane-dense.
    p_full = jnp.dot(p3.reshape(rows, nh).astype(mm_dtype), exp_ref[...],
                     preferred_element_type=jnp.float32)                 # (rows, CW)
    ctx_un = jnp.sum((p_full * kv).reshape(TB, N, CW), axis=1)           # (TB, CW)

    # Deferred softmax normalization: per-(bag, head) reciprocal, expanded to CW width.
    inv = pl.reciprocal(denom, approx=approx_recip)                      # (TB, nh)
    inv_full = jnp.dot(inv.astype(mm_dtype), exp_ref[...],
                       preferred_element_type=jnp.float32)               # (TB, CW)
    ctx = ctx_un * inv_full                                              # score cols -> 0

    # Output projection (Wo zero-padded over the score rows) + classifier ReLU.
    pooled = jnp.dot(ctx.astype(mm_dtype), wot_ref[...],
                     preferred_element_type=jnp.float32) + bo            # (TB, E)
    y = jnp.maximum(pooled, 0.0)

    # Classifier: contract E with the wc row; lane-dense (1, TB) output row.
    out_ref[...] = jax.lax.dot_general(
        wc, y, (((1,), (1,)), ((), ())),
        preferred_element_type=jnp.float32) + bc


# --------------------------------------------------------------------------------------
# Parameter construction (raw, PyTorch-layout) and packing / algebraic folding.
# --------------------------------------------------------------------------------------
def make_params(key, feat_dim, config):
    E = config['emb_dims']
    nh = config['num_heads']
    hd = config['hid_dim']
    ks = jax.random.split(key, 16)

    def rnd(k, shape, scale=0.1):
        return (scale * jax.random.normal(k, shape)).astype(jnp.float32)

    return dict(
        # embedding MLP
        w0=rnd(ks[0], (E, feat_dim)), b0=rnd(ks[1], (1, E)),
        w1=rnd(ks[2], (E, E)), b1=rnd(ks[3], (1, E)),
        # LayerNorms (stored / state / projection), affine init = (1, 0)
        gs=jnp.ones((1, E), jnp.float32), bs=jnp.zeros((1, E), jnp.float32),
        gq=jnp.ones((1, E), jnp.float32), bqn=jnp.zeros((1, E), jnp.float32),
        gp=jnp.ones((1, E), jnp.float32), bpn=jnp.zeros((1, E), jnp.float32),
        # learned pooling (query) pattern, quantity = 1
        qpool=rnd(ks[4], (1, E)),
        # association projections
        wq=rnd(ks[5], (nh * hd, E)), bq=rnd(ks[6], (1, nh * hd)),
        wk=rnd(ks[7], (nh * hd, E)), bk=rnd(ks[8], (1, nh * hd)),
        wv=rnd(ks[9], (nh * hd, E)), bv=rnd(ks[10], (1, nh * hd)),
        wo=rnd(ks[11], (E, nh * hd)), bo=rnd(ks[12], (1, E)),
        # classifier
        wc=rnd(ks[13], (1, E)), bc=rnd(ks[14], (1, 1)),
    )


def pack_params(params, config):
    """Hoist the input-independent query path, fold LN affines / scaling into the weights,
    and build the packed [scores | values] projection, head-expansion matrix and
    zero-padded output projection used by the kernel."""
    E = config['emb_dims']
    nh = config['num_heads']
    hd = config['hid_dim']
    KV = nh * hd
    CW = nh + KV
    scaling = jnp.float32(config['scaling_factor'])

    # state = LN_q(q_pool); q = state Wq^T + bq   (depends only on parameters)
    qp = params['qpool']
    mu = jnp.mean(qp, axis=-1, keepdims=True)
    var = jnp.mean(jnp.square(qp - mu), axis=-1, keepdims=True)
    state = (qp - mu) * jax.lax.rsqrt(var + LN_EPS) * params['gq'] + params['bqn']
    q = state @ params['wq'].T + params['bq']                       # (1, KV)
    qh = q.reshape(nh, hd)

    # scores_h(n) = scaling * q_h . (stored_n Wk_h^T + bk_h) = stored_n . U[:,h] + c[h]
    wk3 = params['wk'].reshape(nh, hd, E)
    U = scaling * jnp.einsum('hde,hd->eh', wk3, qh)                 # (E, nh)
    c = (scaling * jnp.sum(qh * params['bk'].reshape(nh, hd), axis=-1)).reshape(1, nh)

    # Fold stored / projection LayerNorm affines (stored = z*gs + bs, proj = z*gp + bp).
    gs = params['gs'].reshape(E, 1)
    gp = params['gp'].reshape(E, 1)
    U2 = gs * U                                                     # (E, nh)
    c2 = params['bs'] @ U + c                                       # (1, nh)
    wvT = params['wv'].T                                            # (E, KV)
    wv2 = gp * wvT                                                  # (E, KV)
    bv2 = params['bpn'] @ wvT + params['bv']                        # (1, KV)

    # Packed [scores | values] projection (scores first -> cheap prefix slice in kernel).
    wkv = jnp.concatenate([U2, wv2], axis=1)                        # (E, CW)
    bkv = jnp.concatenate([c2, bv2], axis=1)                        # (1, CW)

    # Constant 0/1 head-expansion matrix: head h -> its hd value columns, 0 on score cols.
    expand = np.zeros((nh, CW), np.float32)
    for h in range(nh):
        expand[h, nh + h * hd: nh + (h + 1) * hd] = 1.0
    expand = jnp.asarray(expand)

    # Output projection zero-padded over the score rows so no lane slice is needed.
    wot_pad = jnp.concatenate(
        [jnp.zeros((nh, E), jnp.float32), params['wo'].T.astype(jnp.float32)], axis=0)  # (CW, E)

    VW = max(E, CW, 1)

    def row(v):
        v = jnp.asarray(v, jnp.float32).reshape(-1)
        return jnp.pad(v, (0, VW - v.shape[0]))

    vecs = jnp.stack([row(params['b0']), row(params['b1']), row(bkv),
                      row(params['bo']), row(params['wc']), row(params['bc'])])

    return dict(
        w0t=params['w0'].T.astype(jnp.float32),                     # (F, E)
        w1t=params['w1'].T.astype(jnp.float32),                     # (E, E)
        wkv=wkv.astype(jnp.float32),                                # (E, CW)
        wot=wot_pad,                                                # (CW, E)
        expand=expand,                                              # (nh, CW)
        vecs=vecs.astype(jnp.float32),                              # (6, VW)
    )


# --------------------------------------------------------------------------------------
# Wrapper
# --------------------------------------------------------------------------------------
def hopfield_mil_forward(x, packed, config, bag_tile=512, use_bf16=True):
    x = x.astype(jnp.float32)
    B, N, F = x.shape
    E = config['emb_dims']
    nh = config['num_heads']
    hd = config['hid_dim']

    # Bag tile: big enough to amortize grid overhead / fill the MXU M dim, but aim for
    # >= 2 grid steps on non-tiny batches so both v7x TensorCores are used.
    if B <= 8:
        TB = _round_up(max(B, 1), 8)
    else:
        TB = max(8, min(bag_tile, _round_up(pl.cdiv(B, 2), 8)))
    num_tiles = pl.cdiv(B, TB)
    B_pad = num_tiles * TB
    if B_pad != B:
        x = jnp.pad(x, ((0, B_pad - B), (0, 0), (0, 0)))

    mm_dtype = jnp.bfloat16 if use_bf16 else jnp.float32
    w0t = packed['w0t'].astype(mm_dtype)
    w1t = packed['w1t'].astype(mm_dtype)
    wkv = packed['wkv'].astype(mm_dtype)
    wot = packed['wot'].astype(mm_dtype)
    expand = packed['expand'].astype(mm_dtype)
    vecs = packed['vecs']                                           # stays f32

    # Scoped VMEM budget: the live (TB*N, 128-lane) f32 slabs dominate; leave headroom
    # below physical VMEM (v7x has only 64 MiB).
    slab = TB * N * 128 * 4
    want = 10 * slab + (16 << 20)
    try:
        phys = int(getattr(pltpu.get_tpu_info(), "vmem_capacity_bytes", 64 << 20))
    except Exception:
        phys = 64 << 20
    vmem_limit = int(min(max(want, 32 << 20), phys - (4 << 20)))
    vmem_limit = max(vmem_limit, 16 << 20)

    kernel = functools.partial(_hopfield_mil_kernel, TB, N, F, E, nh, hd, use_bf16)

    out = pl.pallas_call(
        kernel,
        out_shape=jax.ShapeDtypeStruct((num_tiles, TB), jnp.float32),
        grid=(num_tiles,),
        in_specs=[
            pl.BlockSpec((TB, N, F), lambda t: (t, 0, 0)),
            pl.BlockSpec(w0t.shape, lambda t: (0, 0)),
            pl.BlockSpec(w1t.shape, lambda t: (0, 0)),
            pl.BlockSpec(wkv.shape, lambda t: (0, 0)),
            pl.BlockSpec(wot.shape, lambda t: (0, 0)),
            pl.BlockSpec(expand.shape, lambda t: (0, 0)),
            pl.BlockSpec(vecs.shape, lambda t: (0, 0)),
        ],
        out_specs=pl.BlockSpec((1, TB), lambda t: (t, 0)),
        compiler_params=pltpu.CompilerParams(
            dimension_semantics=("parallel",),
            vmem_limit_bytes=vmem_limit),
    )(x, w0t, w1t, wkv, wot, expand, vecs)

    return out.reshape(B_pad)[:B]


# --------------------------------------------------------------------------------------
# Pure-JAX reference (identical math on the raw, unfolded parameters).
# --------------------------------------------------------------------------------------
def reference_forward(x, params, config):
    nh, hd = config['num_heads'], config['hid_dim']
    scaling = float(config['scaling_factor'])
    x = x.astype(jnp.float32)

    def lin(z, w, b):
        return jnp.einsum('...k,ok->...o', z, w) + b[0]

    def ln(z, g, b):
        mu = jnp.mean(z, axis=-1, keepdims=True)
        var = jnp.mean(jnp.square(z - mu), axis=-1, keepdims=True)
        return (z - mu) * jax.lax.rsqrt(var + LN_EPS) * g[0] + b[0]

    h = jnp.maximum(lin(x, params['w0'], params['b0']), 0.0)
    h = jnp.maximum(lin(h, params['w1'], params['b1']), 0.0)          # (B, N, E)

    stored = ln(h, params['gs'], params['bs'])
    proj = ln(h, params['gp'], params['bpn'])
    state = ln(params['qpool'], params['gq'], params['bqn'])          # (1, E)

    q = lin(state, params['wq'], params['bq'])                        # (1, nh*hd)
    k = lin(stored, params['wk'], params['bk'])                       # (B, N, nh*hd)
    v = lin(proj, params['wv'], params['bv'])                         # (B, N, nh*hd)

    B, N, _ = k.shape
    qh = q.reshape(1, nh, hd)
    kh = k.reshape(B, N, nh, hd)
    vh = v.reshape(B, N, nh, hd)
    s = scaling * jnp.einsum('qhd,bnhd->bhn', qh, kh)                 # (B, nh, N)
    s = s - jnp.max(s, axis=-1, keepdims=True)
    p = jnp.exp(s)
    p = p / jnp.sum(p, axis=-1, keepdims=True)
    ctx = jnp.einsum('bhn,bnhd->bhd', p, vh).reshape(B, nh * hd)      # (B, nh*hd)

    pooled = lin(ctx, params['wo'], params['bo'])                     # (B, E)
    y = jnp.maximum(pooled, 0.0)
    out = lin(y, params['wc'], params['bc'])                          # (B, 1)
    return out.reshape(B)


if __name__ == "__main__":
    key = jax.random.PRNGKey(0)
    kx, kx2, kp = jax.random.split(key, 3)
    params = make_params(kp, FEAT_DIM, CONFIG)
    packed = pack_params(params, CONFIG)

    # Small case (single tile).
    B, N = 2, 8
    x = jax.random.normal(kx, (B, N, FEAT_DIM), dtype=jnp.float32)
    y_ref = jax.block_until_ready(reference_forward(x, params, CONFIG))

    # Exact-math path (f32 matmuls): proves the restructured kernel math at tight tolerance.
    y_f32 = jax.block_until_ready(hopfield_mil_forward(x, packed, CONFIG, use_bf16=False))
    assert y_f32.shape == (B,), y_f32.shape
    np.testing.assert_allclose(np.asarray(y_f32), np.asarray(y_ref), rtol=1e-5, atol=1e-5)

    # Fast path (bf16 MXU operands, f32 accumulation / elementwise).
    y_bf16 = jax.block_until_ready(hopfield_mil_forward(x, packed, CONFIG, use_bf16=True))
    np.testing.assert_allclose(np.asarray(y_bf16), np.asarray(y_ref), rtol=5e-2, atol=1e-2)

    # Larger batch exercising multi-tile grid (>= 2 tiles) + batch padding, bf16 path.
    B2 = 130
    x2 = jax.random.normal(kx2, (B2, N, FEAT_DIM), dtype=jnp.float32)
    y2 = jax.block_until_ready(hopfield_mil_forward(x2, packed, CONFIG, use_bf16=True))
    y2_ref = jax.block_until_ready(reference_forward(x2, params, CONFIG))
    assert y2.shape == (B2,), y2.shape
    np.testing.assert_allclose(np.asarray(y2), np.asarray(y2_ref), rtol=5e-2, atol=1e-2)

    print("KERNEL_OK")
</pallas_src>

<mosaic_0001>
module attributes {stable_mosaic.version = 11 : i64} {
  func.func @_hopfield_mil_kernel(%arg0: i32, %arg1: memref<8x8x32xf32, #tpu.memory_space<vmem>>, %arg2: memref<32x32xf32, #tpu.memory_space<vmem>>, %arg3: memref<32x32xf32, #tpu.memory_space<vmem>>, %arg4: memref<32x68xf32, #tpu.memory_space<vmem>>, %arg5: memref<68x32xf32, #tpu.memory_space<vmem>>, %arg6: memref<4x68xf32, #tpu.memory_space<vmem>>, %arg7: memref<6x68xf32, #tpu.memory_space<vmem>>, %arg8: memref<1x8xf32, #tpu.memory_space<vmem>>) attributes {dimension_semantics = [#tpu.dimension_semantics<parallel>], iteration_bounds = array<i64: 1>, scalar_prefetch = 0 : i64, scratch_operands = 0 : i64, tpu.core_type = #tpu.core_type<tc>, window_params = [{transform_indices = @transform_0, window_bounds = array<i64: 8, 8, 32>}, {pipeline_mode = #tpu.pipeline_mode<synchronous>, transform_indices = @transform_1, window_bounds = array<i64: 32, 32>}, {pipeline_mode = #tpu.pipeline_mode<synchronous>, transform_indices = @transform_2, window_bounds = array<i64: 32, 32>}, {pipeline_mode = #tpu.pipeline_mode<synchronous>, transform_indices = @transform_3, window_bounds = array<i64: 32, 68>}, {pipeline_mode = #tpu.pipeline_mode<synchronous>, transform_indices = @transform_4, window_bounds = array<i64: 68, 32>}, {pipeline_mode = #tpu.pipeline_mode<synchronous>, transform_indices = @transform_5, window_bounds = array<i64: 4, 68>}, {pipeline_mode = #tpu.pipeline_mode<synchronous>, transform_indices = @transform_6, window_bounds = array<i64: 6, 68>}, {transform_indices = @transform_7, window_bounds = array<i64: 1, 8>}]} {
    %c0 = arith.constant 0 : index
    %c0_0 = arith.constant 0 : index
    %c0_1 = arith.constant 0 : index
    %0 = vector.load %arg1[%c0, %c0_0, %c0_1] : memref<8x8x32xf32, #tpu.memory_space<vmem>>, vector<8x8x32xf32>
    %1 = vector.shape_cast %0 : vector<8x8x32xf32> to vector<64x32xf32>
    %c0_2 = arith.constant 0 : index
    %c0_3 = arith.constant 0 : index
    %2 = vector.load %arg7[%c0_2, %c0_3] : memref<6x68xf32, #tpu.memory_space<vmem>>, vector<6x68xf32>
    %3 = vector.extract_strided_slice %2 {offsets = [0, 0], sizes = [1, 32], strides = [1, 1]} : vector<6x68xf32> to vector<1x32xf32>
    %4 = vector.extract_strided_slice %2 {offsets = [1, 0], sizes = [1, 32], strides = [1, 1]} : vector<6x68xf32> to vector<1x32xf32>
    %5 = vector.extract_strided_slice %2 {offsets = [2, 0], sizes = [1, 68], strides = [1, 1]} : vector<6x68xf32> to vector<1x68xf32>
    %6 = vector.extract_strided_slice %2 {offsets = [3, 0], sizes = [1, 32], strides = [1, 1]} : vector<6x68xf32> to vector<1x32xf32>
    %7 = vector.extract_strided_slice %2 {offsets = [4, 0], sizes = [1, 32], strides = [1, 1]} : vector<6x68xf32> to vector<1x32xf32>
    %8 = vector.extract_strided_slice %2 {offsets = [5, 0], sizes = [1, 1], strides = [1, 1]} : vector<6x68xf32> to vector<1x1xf32>
    %c0_4 = arith.constant 0 : index
    %c0_5 = arith.constant 0 : index
    %9 = vector.load %arg2[%c0_4, %c0_5] : memref<32x32xf32, #tpu.memory_space<vmem>>, vector<32x32xf32>
    %cst = arith.constant dense<0.000000e+00> : vector<64x32xf32>
    %10 = tpu.matmul %1, %9, %cst {dimension_numbers = #tpu.dot_dimension_numbers<[1], [0], [0], [1], [0, 0, 1, 1], [], []>} : vector<64x32xf32>, vector<32x32xf32>, vector<64x32xf32> -> vector<64x32xf32>
    %11 = vector.broadcast %3 : vector<1x32xf32> to vector<64x32xf32>
    %12 = arith.addf %10, %11 : vector<64x32xf32>
    %cst_6 = arith.constant 0.000000e+00 : f32
    %13 = vector.broadcast %cst_6 : f32 to vector<64x32xf32>
    %14 = arith.maximumf %12, %13 : vector<64x32xf32>
    %c0_7 = arith.constant 0 : index
    %c0_8 = arith.constant 0 : index
    %15 = vector.load %arg3[%c0_7, %c0_8] : memref<32x32xf32, #tpu.memory_space<vmem>>, vector<32x32xf32>
    %cst_9 = arith.constant dense<0.000000e+00> : vector<64x32xf32>
    %16 = tpu.matmul %14, %15, %cst_9 {dimension_numbers = #tpu.dot_dimension_numbers<[1], [0], [0], [1], [0, 0, 1, 1], [], []>} : vector<64x32xf32>, vector<32x32xf32>, vector<64x32xf32> -> vector<64x32xf32>
    %17 = vector.broadcast %4 : vector<1x32xf32> to vector<64x32xf32>
    %18 = arith.addf %16, %17 : vector<64x32xf32>
    %cst_10 = arith.constant 0.000000e+00 : f32
    %19 = vector.broadcast %cst_10 : f32 to vector<64x32xf32>
    %20 = arith.maximumf %18, %19 : vector<64x32xf32>
    %cst_11 = arith.constant dense<0.000000e+00> : vector<64xf32>
    %21 = vector.multi_reduction <add>, %20, %cst_11 [1] : vector<64x32xf32> to vector<64xf32>
    %22 = vector.shape_cast %21 : vector<64xf32> to vector<64x1xf32>
    %cst_12 = arith.constant 3.200000e+01 : f32
    %23 = vector.broadcast %cst_12 : f32 to vector<64x1xf32>
    %24 = arith.divf %22, %23 : vector<64x1xf32>
    %25 = vector.broadcast %24 : vector<64x1xf32> to vector<64x32xf32>
    %26 = arith.subf %20, %25 : vector<64x32xf32>
    %27 = arith.mulf %26, %26 : vector<64x32xf32>
    %cst_13 = arith.constant dense<0.000000e+00> : vector<64xf32>
    %28 = vector.multi_reduction <add>, %27, %cst_13 [1] : vector<64x32xf32> to vector<64xf32>
    %29 = vector.shape_cast %28 : vector<64xf32> to vector<64x1xf32>
    %cst_14 = arith.constant 3.200000e+01 : f32
    %30 = vector.broadcast %cst_14 : f32 to vector<64x1xf32>
    %31 = arith.divf %29, %30 : vector<64x1xf32>
    %32 = vector.broadcast %24 : vector<64x1xf32> to vector<64x32xf32>
    %33 = arith.subf %20, %32 : vector<64x32xf32>
    %cst_15 = arith.constant 9.99999974E-6 : f32
    %34 = vector.broadcast %cst_15 : f32 to vector<64x1xf32>
    %35 = arith.addf %31, %34 : vector<64x1xf32>
    %36 = math.rsqrt %35 : vector<64x1xf32>
    %37 = vector.broadcast %36 : vector<64x1xf32> to vector<64x32xf32>
    %38 = arith.mulf %33, %37 : vector<64x32xf32>
    %c0_16 = arith.constant 0 : index
    %c0_17 = arith.constant 0 : index
    %39 = vector.load %arg4[%c0_16, %c0_17] : memref<32x68xf32, #tpu.memory_space<vmem>>, vector<32x68xf32>
    %cst_18 = arith.constant dense<0.000000e+00> : vector<64x68xf32>
    %40 = tpu.matmul %38, %39, %cst_18 {dimension_numbers = #tpu.dot_dimension_numbers<[1], [0], [0], [1], [0, 0, 1, 1], [], []>} : vector<64x32xf32>, vector<32x68xf32>, vector<64x68xf32> -> vector<64x68xf32>
    %41 = vector.broadcast %5 : vector<1x68xf32> to vector<64x68xf32>
    %42 = arith.addf %40, %41 : vector<64x68xf32>
    %43 = vector.extract_strided_slice %42 {offsets = [0, 0], sizes = [64, 4], strides = [1, 1]} : vector<64x68xf32> to vector<64x4xf32>
    %44 = vector.shape_cast %43 : vector<64x4xf32> to vector<8x8x4xf32>
    %cst_19 = arith.constant dense<0xFF800000> : vector<8x4xf32>
    %45 = vector.multi_reduction <maximumf>, %44, %cst_19 [1] : vector<8x8x4xf32> to vector<8x4xf32>
    %46 = vector.shape_cast %45 : vector<8x4xf32> to vector<8x1x4xf32>
    %47 = vector.broadcast %46 : vector<8x1x4xf32> to vector<8x8x4xf32>
    %48 = arith.subf %44, %47 : vector<8x8x4xf32>
    %49 = math.exp %48 : vector<8x8x4xf32>
    %cst_20 = arith.constant dense<0.000000e+00> : vector<8x4xf32>
    %50 = vector.multi_reduction <add>, %49, %cst_20 [1] : vector<8x8x4xf32> to vector<8x4xf32>
    %51 = vector.shape_cast %49 : vector<8x8x4xf32> to vector<64x4xf32>
    %c0_21 = arith.constant 0 : index
    %c0_22 = arith.constant 0 : index
    %52 = vector.load %arg6[%c0_21, %c0_22] : memref<4x68xf32, #tpu.memory_space<vmem>>, vector<4x68xf32>
    %cst_23 = arith.constant dense<0.000000e+00> : vector<64x68xf32>
    %53 = tpu.matmul %51, %52, %cst_23 {dimension_numbers = #tpu.dot_dimension_numbers<[1], [0], [0], [1], [0, 0, 1, 1], [], []>} : vector<64x4xf32>, vector<4x68xf32>, vector<64x68xf32> -> vector<64x68xf32>
    %54 = arith.mulf %53, %42 : vector<64x68xf32>
    %55 = vector.shape_cast %54 : vector<64x68xf32> to vector<8x8x68xf32>
    %cst_24 = arith.constant dense<0.000000e+00> : vector<8x68xf32>
    %56 = vector.multi_reduction <add>, %55, %cst_24 [1] : vector<8x8x68xf32> to vector<8x68xf32>
    %57 = tpu.reciprocal %50 : vector<8x4xf32> -> vector<8x4xf32>
    %c0_25 = arith.constant 0 : index
    %c0_26 = arith.constant 0 : index
    %58 = vector.load %arg6[%c0_25, %c0_26] : memref<4x68xf32, #tpu.memory_space<vmem>>, vector<4x68xf32>
    %cst_27 = arith.constant dense<0.000000e+00> : vector<8x68xf32>
    %59 = tpu.matmul %57, %58, %cst_27 {dimension_numbers = #tpu.dot_dimension_numbers<[1], [0], [0], [1], [0, 0, 1, 1], [], []>} : vector<8x4xf32>, vector<4x68xf32>, vector<8x68xf32> -> vector<8x68xf32>
    %60 = arith.mulf %56, %59 : vector<8x68xf32>
    %c0_28 = arith.constant 0 : index
    %c0_29 = arith.constant 0 : index
    %61 = vector.load %arg5[%c0_28, %c0_29] : memref<68x32xf32, #tpu.memory_space<vmem>>, vector<68x32xf32>
    %cst_30 = arith.constant dense<0.000000e+00> : vector<8x32xf32>
    %62 = tpu.matmul %60, %61, %cst_30 {dimension_numbers = #tpu.dot_dimension_numbers<[1], [0], [0], [1], [0, 0, 1, 1], [], []>} : vector<8x68xf32>, vector<68x32xf32>, vector<8x32xf32> -> vector<8x32xf32>
    %63 = vector.broadcast %6 : vector<1x32xf32> to vector<8x32xf32>
    %64 = arith.addf %62, %63 : vector<8x32xf32>
    %cst_31 = arith.constant 0.000000e+00 : f32
    %65 = vector.broadcast %cst_31 : f32 to vector<8x32xf32>
    %66 = arith.maximumf %64, %65 : vector<8x32xf32>
    %cst_32 = arith.constant dense<0.000000e+00> : vector<1x8xf32>
    %67 = tpu.matmul %7, %66, %cst_32 {dimension_numbers = #tpu.dot_dimension_numbers<[1], [1], [0], [0], [0, 0, 1, 0], [], []>} : vector<1x32xf32>, vector<8x32xf32>, vector<1x8xf32> -> vector<1x8xf32>
    %68 = vector.broadcast %8 : vector<1x1xf32> to vector<1x8xf32>
    %69 = arith.addf %67, %68 : vector<1x8xf32>
    %c0_33 = arith.constant 0 : index
    %c0_34 = arith.constant 0 : index
    %70 = vector.load %arg8[%c0_33, %c0_34] : memref<1x8xf32, #tpu.memory_space<vmem>>, vector<1x8xf32>
    tpu.vector_store %arg8[%c0_33, %c0_34], %69 {strides = array<i32>} : memref<1x8xf32, #tpu.memory_space<vmem>>, vector<1x8xf32>,
    return
  }
  func.func @transform_0(%arg0: i32) -> (i32, i32, i32) {
    %c0_i32 = arith.constant 0 : i32
    %c0_i32_0 = arith.constant 0 : i32
    %c0_i32_1 = arith.constant 0 : i32
    return %arg0, %c0_i32, %c0_i32_0 : i32, i32, i32
  }
  func.func @transform_1(%arg0: i32) -> (i32, i32) {
    %c0_i32 = arith.constant 0 : i32
    %c0_i32_0 = arith.constant 0 : i32
    %c0_i32_1 = arith.constant 0 : i32
    return %c0_i32, %c0_i32_0 : i32, i32
  }
  func.func @transform_2(%arg0: i32) -> (i32, i32) {
    %c0_i32 = arith.constant 0 : i32
    %c0_i32_0 = arith.constant 0 : i32
    %c0_i32_1 = arith.constant 0 : i32
    return %c0_i32, %c0_i32_0 : i32, i32
  }
  func.func @transform_3(%arg0: i32) -> (i32, i32) {
    %c0_i32 = arith.constant 0 : i32
    %c0_i32_0 = arith.constant 0 : i32
    %c0_i32_1 = arith.constant 0 : i32
    return %c0_i32, %c0_i32_0 : i32, i32
  }
  func.func @transform_4(%arg0: i32) -> (i32, i32) {
    %c0_i32 = arith.constant 0 : i32
    %c0_i32_0 = arith.constant 0 : i32
    %c0_i32_1 = arith.constant 0 : i32
    return %c0_i32, %c0_i32_0 : i32, i32
  }
  func.func @transform_5(%arg0: i32) -> (i32, i32) {
    %c0_i32 = arith.constant 0 : i32
    %c0_i32_0 = arith.constant 0 : i32
    %c0_i32_1 = arith.constant 0 : i32
    return %c0_i32, %c0_i32_0 : i32, i32
  }
  func.func @transform_6(%arg0: i32) -> (i32, i32) {
    %c0_i32 = arith.constant 0 : i32
    %c0_i32_0 = arith.constant 0 : i32
    %c0_i32_1 = arith.constant 0 : i32
    return %c0_i32, %c0_i32_0 : i32, i32
  }
  func.func @transform_7(%arg0: i32) -> (i32, i32) {
    %c0_i32 = arith.constant 0 : i32
    %c0_i32_0 = arith.constant 0 : i32
    return %arg0, %c0_i32 : i32, i32
  }
}

</mosaic_0001>

<bundles_post_ra>
// kernel: tpu_custom_call.1
= control target key start
LH: loop header
LB: loop body
LE: loop exit
PB: predicated region body
PF: predicated region fallthrough
CT: control target
= control target key end

     0   :  { %12 = vsyncpa [#allocation3], 0  ;;  %s1991_s0 = inlined_call_operand.vmem [shape: f32[8,8,32], index: 0, kind: input, shape index: {}]   ;;  %s1992_s1 = inlined_call_operand.vmem [shape: f32[32,32], index: 1, kind: input, shape index: {}]   ;;  %s1993_s2 = inlined_call_operand.hbm [shape: f32[32,32], index: 2, kind: input, shape index: {}]   ;;  %s1994_s3 = inlined_call_operand.hbm [shape: f32[32,68], index: 3, kind: input, shape index: {}]   ;;  %s1995_s4 = inlined_call_operand.vmem [shape: f32[68,32], index: 4, kind: input, shape index: {}]   ;;  %s1996_s5 = inlined_call_operand.vmem [shape: f32[4,68], index: 5, kind: input, shape index: {}]   ;;  %s1997_s6 = inlined_call_operand.vmem [shape: f32[6,68], index: 6, kind: input, shape index: {}]   ;;  %s1998_s7 = inlined_call_operand.hbm [shape: f32[1,8], index: 7, kind: output, shape index: {}]  }
   0x1   :  { %13 = vsyncpa [#allocation6], 0 }
   0x2   :  { %14 = vsyncpa [#allocation4], 0  ;;  %s1640_s24 = smov [#allocation2]   ;;  %s1568_s28 = scalar_lea.hbm %s1993_s2, 512 }
   0x3   :  { %s24_s25 = sshll.u32 %s1640_s24, 4  ;;  %p1569_p0 = scmp.ne.s32.totalorder %s1993_s2, %s1568_s28  ;;  %s25_s25 = int_to_ptr.vmem [resolvable:$true] %s24_s25 }
   0x4   :  { %p1572_p1 = scmp.lt.u32.totalorder %s1568_s28, %s1993_s2 }
   0x6   :  { %p1574_p2 = pnand %p1572_p1, %p1569_p0 }
   0x8   :  { %1577 = shalt.err (!%p1574_p2)
}
   0x9   :  { %s1578_s10 = scalar_lea.vmem %s25_s25, 512  ;;  %p1583_p4 = scmp.lt.s32.totalorder %s25_s25, %s25_s25 }
   0xa   :  { %p1579_p3 = scmp.ne.s32.totalorder %s25_s25, %s1578_s10  ;;  %p1584_p5 = scmp.lt.s32.totalorder %s1578_s10, %s1578_s10 }
   0xc   :  { %p1585_p6 = por %p1584_p5, %p1583_p4 }
   0xe   :  { %p1586_p7 = pnand %p1585_p6, %p1579_p3 }
  0x10   :  { %1589 = shalt.err (!%p1586_p7)
}
  0x11   :  { %s1641_s11 = smov 128   ;;  %s1642_s12 = smov 8  }
  0x12   :  { %30 = dma.hbm_to_vmem [thread:$0]  %s1993_s2, 512, %s25_s25, [#allocation3], %s1641_s11, %s1641_s11, %s1642_s12  }
  0x13   :  { %s1643_s15 = smov [#allocation5]   ;;  %s1590_s19 = scalar_lea.hbm %s1994_s3, 512 }
  0x14   :  { %s36_s16 = sshll.u32 %s1643_s15, 4  ;;  %p1591_p8 = scmp.ne.s32.totalorder %s1994_s3, %s1590_s19  ;;  %s37_s16 = int_to_ptr.vmem [resolvable:$true] %s36_s16 }
  0x15   :  { %p1594_p9 = scmp.lt.u32.totalorder %s1590_s19, %s1994_s3 }
  0x17   :  { %p1596_p10 = pnand %p1594_p9, %p1591_p8 }
  0x19   :  { %1599 = shalt.err (!%p1596_p10)
}
  0x1a   :  { %s1600_s24 = scalar_lea.vmem %s37_s16, 512  ;;  %p1605_p12 = scmp.lt.s32.totalorder %s37_s16, %s37_s16 }
  0x1b   :  { %p1601_p11 = scmp.ne.s32.totalorder %s37_s16, %s1600_s24  ;;  %p1606_p13 = scmp.lt.s32.totalorder %s1600_s24, %s1600_s24 }
  0x1d   :  { %p1607_p0 = por %p1606_p13, %p1605_p12 }
  0x1f   :  { %p1608_p1 = pnand %p1607_p0, %p1601_p11 }
  0x21   :  { %1611 = shalt.err (!%p1608_p1)
}
  0x22   :  { %42 = dma.hbm_to_vmem [thread:$0]  %s1994_s3, 512, %s37_s16, [#allocation6], %s1641_s11, %s1641_s11, %s1642_s12  }
  0x23   :  { %1634 = dma.done.wait [#allocation3], 512  }
  0x24   :  { %1635 = vsyncadd [#allocation3], 4294966784 }
  0x25   :  { %1636 = dma.done.wait [#allocation6], 512  }
  0x26   :  { %1637 = vsyncadd [#allocation6], 4294966784  ;;  %vm72_vm0 = vcmask 261120   ;;  %v64_v0 = vld [vmem:[%s1992_s1] sm:$0xff]  ;;  %v65_v1 = vld [vmem:[%s1992_s1 + $0x8] sm:$0xff]  ;;  %v68_v20 = vlaneseq  ;;  %vm759_vm1 = vcmask 1043456  }
  0x27   :  { %v66_v2 = vld [vmem:[%s1992_s1 + $0x10] sm:$0xff]  ;;  %v1473_v3 = vpack.c.bf16 %v65_v1, %v64_v0  ;;  %v67_v4 = vld [vmem:[%s1992_s1 + $0x18] sm:$0xff]  ;;  %v55_v5 = vld [vmem:[%s1991_s0] sm:$0xff]  ;;  %vm1645_vm2 = vmmov 0   ;;  %vm597_vm3 = vcmask 31744   ;;  %vm949_vm4 = vcmask 1041409  }
  0x28   :  { %v1477_v6 = vpack.c.bf16 %v67_v4, %v66_v2  ;;  %1376 = vmatprep.mubr.msk.f32.mxu0 %vm72_vm0, %v55_v5  ;;  %v210_v7 = vld [vmem:[#allocation2] sm:$0xff]  ;;  %v211_v8 = vld [vmem:[#allocation2 + $0x8] sm:$0xff]  ;;  %v57_v11 = vld [vmem:[%s1991_s0 + $0x10] sm:$0xff]  ;;  %v1757_v21 = vshrl.u32 %v68_v20, 7  ;;  %vm951_vm5 = vcmask 1042434   ;;  %vm953_vm6 = vcmask 1043459  }
  0x29   :  { %1474 = vmatprep.subr.bf16.mxu0 %v1473_v3  ;;  %v1481_v9 = vpack.c.bf16 %v211_v8, %v210_v7  ;;  %v56_v10 = vld [vmem:[%s1991_s0 + $0x8] sm:$0xff]  ;;  %v58_v12 = vld [vmem:[%s1991_s0 + $0x18] sm:$0xff]  ;;  %v59_v13 = vld [vmem:[%s1991_s0 + $0x20] sm:$0xff]  ;;  %vm955_vm7 = vcmask 1044484   ;;  %vm957_vm8 = vcmask 1045509   ;;  %vm959_vm9 = vcmask 1046534  }
  0x2a   :  { %1476 = vmatpush3.bf16.msra.mxu0 %v1473_v3  ;;  %v60_v14 = vld [vmem:[%s1991_s0 + $0x28] sm:$0xff]  ;;  %v61_v15 = vld [vmem:[%s1991_s0 + $0x30] sm:$0xff]  ;;  %v62_v16 = vld [vmem:[%s1991_s0 + $0x38] sm:$0xff]  ;;  %v70_v22 = vsub.s32 0, %v1757_v21  ;;  %v216_v49 = vsub.s32 1, %v1757_v21  ;;  %vm961_vm10 = vcmask 1047559  }
  0x2b   :  { %1478 = vmatprep.subr.bf16.mxu0 %v1477_v6  ;;  %1482 = vmatprep.subr.bf16.mxu1 %v1481_v9  ;;  %v212_v17 = vld [vmem:[#allocation2 + $0x10] sm:$0xff]  ;;  %v213_v18 = vld [vmem:[#allocation2 + $0x18] sm:$0xff]  ;;  %v1763_v23 = vld [vmem:[%s1997_s6] sm:$0x3f]  ;;  %vm876_vm11 = vcmask 556032   ;;  %s1648_s20 = smov [#allocation7]  }
  0x2c   :  { %1484 = vmatpush3.bf16.msra.mxu1 %v1481_v9  ;;  %v1485_v19 = vpack.c.bf16 %v213_v18, %v212_v17  ;;  %v71_v24 = vrot.slane %v1763_v23, %v70_v22  ;;  %v217_v50 = vrot.slane %v1763_v23, %v216_v49  ;;  %s1260_s21 = sshll.u32 %s1648_s20, 4  ;;  %vm1252_vm12 = vcmask 57344   ;;  %s1261_s21 = int_to_ptr.vmem [resolvable:$true] %s1260_s21 }
  0x2d   :  { %s1616_s22 = scalar_lea.vmem %s1261_s21, 32  ;;  %p1617_p3 = scmp.lt.s32.totalorder %s1261_s21, %s1261_s21 }
  0x2e   :  { %1480 = vmatpush3.bf16.msra.mxu0 %v1477_v6  ;;  %1486 = vmatprep.subr.bf16.mxu1 %v1485_v19 }
  0x30   :  { %1488 = vmatpush3.bf16.msra.mxu1 %v1485_v19 }
  0x31   :  { %1377 = vmatmul.mubr.msk.f32.vlgmr.msra.gmra.mrb[0].mxu0 %vm72_vm0, %v56_v10 }
  0x32   :  { %1379 = vmatprep.mubr.msk.f32.mxu0 %vm72_vm0, %v57_v11 }
  0x35   :  { %1380 = vmatmul.mubr.msk.f32.gmra.mrb[2].mxu0 %vm72_vm0, %v58_v12 }
  0x36   :  { %1382 = vmatprep.mubr.msk.f32.mxu0 %vm72_vm0, %v59_v13 }
  0x39   :  { %1383 = vmatmul.mubr.msk.f32.gmra.mrb[4].mxu0 %vm72_vm0, %v60_v14 }
  0x3a   :  { %1385 = vmatprep.mubr.msk.f32.mxu0 %vm72_vm0, %v61_v15 }
  0x3d   :  { %1386 = vmatmul.mubr.msk.f32.gmra.mrb[6].mxu0 %vm72_vm0, %v62_v16 }
 0x104   :  { %v1378_v25 = vpop.f32.mrb[0].mxu0 }
 0x105   :  { %v169_v26 = vadd.f32 %v1378_v25, %v71_v24  ;;  %v163_v27 = vpop.f32.mrb[1].mxu0 }
 0x106   :  { %v164_v28 = vadd.f32 %v163_v27, %v71_v24 }
 0x107   :  { %v203_v31 = vmax.f32 %v169_v26, 0.0 }
 0x108   :  { %v202_v29 = vmax.f32 %v164_v28, 0.0  ;;  %v1381_v30 = vpop.f32.mrb[2].mxu0 }
 0x109   :  { %v179_v32 = vadd.f32 %v1381_v30, %v71_v24  ;;  %v173_v33 = vpop.f32.mrb[3].mxu0 }
 0x10a   :  { %v174_v34 = vadd.f32 %v173_v33, %v71_v24  ;;  %1396 = vmatprep.mubr.msk.f32.mxu1 %vm72_vm0, %v202_v29 }
 0x10b   :  { %1397 = vmatmul.mubr.msk.f32.vlgmr.msra.gmra.mrb[0].mxu1 %vm72_vm0, %v203_v31  ;;  %v205_v37 = vmax.f32 %v179_v32, 0.0 }
 0x10c   :  { %v204_v35 = vmax.f32 %v174_v34, 0.0  ;;  %v1384_v36 = vpop.f32.mrb[4].mxu0 }
 0x10d   :  { %v189_v38 = vadd.f32 %v1384_v36, %v71_v24  ;;  %v183_v39 = vpop.f32.mrb[5].mxu0 }
 0x10e   :  { %v184_v40 = vadd.f32 %v183_v39, %v71_v24  ;;  %1399 = vmatprep.mubr.msk.f32.mxu1 %vm72_vm0, %v204_v35 }
 0x10f   :  { %v207_v41 = vmax.f32 %v189_v38, 0.0  ;;  %1400 = vmatmul.mubr.msk.f32.gmra.mrb[2].mxu1 %vm72_vm0, %v205_v37 }
 0x110   :  { %v206_v42 = vmax.f32 %v184_v40, 0.0  ;;  %v1387_v43 = vpop.f32.mrb[6].mxu0 }
 0x111   :  { %v199_v44 = vadd.f32 %v1387_v43, %v71_v24  ;;  %v193_v45 = vpop.f32.mrb[7].mxu0 }
 0x112   :  { %v194_v46 = vadd.f32 %v193_v45, %v71_v24  ;;  %1402 = vmatprep.mubr.msk.f32.mxu1 %vm72_vm0, %v206_v42 }
 0x113   :  { %v209_v47 = vmax.f32 %v199_v44, 0.0  ;;  %1403 = vmatmul.mubr.msk.f32.gmra.mrb[4].mxu1 %vm72_vm0, %v207_v41 }
 0x114   :  { %v208_v48 = vmax.f32 %v194_v46, 0.0 }
 0x116   :  { %1405 = vmatprep.mubr.msk.f32.mxu1 %vm72_vm0, %v208_v48 }
 0x117   :  { %1406 = vmatmul.mubr.msk.f32.gmra.mrb[6].mxu1 %vm72_vm0, %v209_v47 }
 0x1de   :  { %v1398_v51 = vpop.f32.mrb[0].mxu1 }
 0x1df   :  { %v308_v52 = vpop.f32.mrb[1].mxu1  ;;  %v314_v53 = vadd.f32 %v1398_v51, %v217_v50 }
 0x1e0   :  { %v309_v54 = vadd.f32 %v308_v52, %v217_v50 }
 0x1e1   :  { %v348_v59 = vmax.f32 %v314_v53, 0.0 }
 0x1e2   :  { %v347_v55 = vmax.f32 %v309_v54, 0.0  ;;  %v1401_v56 = vpop.f32.mrb[2].mxu1 }
 0x1e3   :  { %v324_v57 = vadd.f32 %v1401_v56, %v217_v50  ;;  %v318_v58 = vpop.f32.mrb[3].mxu1  ;;  %v358_v5 = vsel %vm72_vm0, %v348_v59, 0.0 }
 0x1e4   :  { %v319_v60 = vadd.f32 %v318_v58, %v217_v50  ;;  %v355_v61 = vsel %vm72_vm0, %v347_v55, 0.0 }
 0x1e5   :  { %356 = vadd.xlane.f32.xlu0 %v355_v61  ;;  %v350_v0 = vmax.f32 %v324_v57, 0.0  ;;  %v460_v61 = vld [vmem:[#allocation5] sm:$0xff] }
 0x1e6   :  { %v349_v62 = vmax.f32 %v319_v60, 0.0  ;;  %v1404_v63 = vpop.f32.mrb[4].mxu1 }
 0x1e7   :  { %v328_v1 = vpop.f32.mrb[5].mxu1  ;;  %v334_v2 = vadd.f32 %v1404_v63, %v217_v50  ;;  %v364_v9 = vsel %vm72_vm0, %v350_v0, 0.0 }
 0x1e8   :  { %v329_v3 = vadd.f32 %v328_v1, %v217_v50  ;;  %v361_v4 = vsel %vm72_vm0, %v349_v62, 0.0  ;;  %v463_v1 = vld [vmem:[#allocation5 + $0x18] sm:$0xff] }
 0x1e9   :  { %362 = vadd.xlane.f32.xlu1 %v361_v4  ;;  %359 = vadd.xlane.f32.xlu0 %v358_v5  ;;  %v352_v10 = vmax.f32 %v334_v2, 0.0 }
 0x1ea   :  { %v351_v6 = vmax.f32 %v329_v3, 0.0  ;;  %v1407_v7 = vpop.f32.mrb[6].mxu1 }
 0x1eb   :  { %v338_v8 = vpop.f32.mrb[7].mxu1  ;;  %v344_v11 = vadd.f32 %v1407_v7, %v217_v50  ;;  %v370_v16 = vsel %vm72_vm0, %v352_v10, 0.0 }
 0x1ec   :  { %v339_v12 = vadd.f32 %v338_v8, %v217_v50  ;;  %v367_v13 = vsel %vm72_vm0, %v351_v6, 0.0 }
 0x1ed   :  { %365 = vadd.xlane.f32.xlu1 %v364_v9  ;;  %368 = vadd.xlane.f32.xlu0 %v367_v13  ;;  %v354_v15 = vmax.f32 %v344_v11, 0.0 }
 0x1ee   :  { %v353_v14 = vmax.f32 %v339_v12, 0.0 }
 0x1ef   :  { %v376_v18 = vsel %vm72_vm0, %v354_v15, 0.0 }
 0x1f0   :  { %v373_v17 = vsel %vm72_vm0, %v353_v14, 0.0 }
 0x1f1   :  { %371 = vadd.xlane.f32.xlu1 %v370_v16  ;;  %374 = vadd.xlane.f32.xlu0 %v373_v17 }
 0x1f5   :  { %377 = vadd.xlane.f32.xlu1 %v376_v18 }
 0x272   :  { %v357_v19 = vpop.xlane.xlu0 %356 }
 0x273   :  { %v380_v20 = vmul.f32 0.03125, %v357_v19 }
 0x275   :  { %v1784_v22 = vsub.f32 %v347_v55, %v380_v20 }
 0x276   :  { %v363_v24 = vpop.xlane.xlu1 %362  ;;  %v360_v25 = vpop.xlane.xlu0 %359 }
 0x277   :  { %v382_v26 = vmul.f32 0.03125, %v363_v24  ;;  %v381_v27 = vmul.f32 0.03125, %v360_v25  ;;  %v396_v28 = vmul.f32 %v1784_v22, %v1784_v22 }
 0x279   :  { %v1788_v29 = vsub.f32 %v349_v62, %v382_v26  ;;  %v1790_v30 = vsub.f32 %v348_v59, %v381_v27  ;;  %v404_v31 = vsel %vm72_vm0, %v396_v28, 0.0  ;;  %v461_v62 = vld [vmem:[#allocation5 + $0x8] sm:$0xff] }
 0x27a   :  { %v366_v32 = vpop.xlane.xlu1 %365  ;;  %405 = vadd.xlane.f32.xlu0 %v404_v31  ;;  %v369_v33 = vpop.xlane.xlu0 %368  ;;  %v1489_v63 = vpack.c.bf16 %v461_v62, %v460_v61 }
 0x27b   :  { %v383_v34 = vmul.f32 0.03125, %v366_v32  ;;  %v384_v35 = vmul.f32 0.03125, %v369_v33  ;;  %v398_v36 = vmul.f32 %v1788_v29, %v1788_v29  ;;  %v397_v37 = vmul.f32 %v1790_v30, %v1790_v30 }
 0x27c   :  { %1490 = vmatprep.subr.bf16.mxu0 %v1489_v63 }
 0x27d   :  { %v1797_v38 = vsub.f32 %v350_v0, %v383_v34  ;;  %v1799_v39 = vsub.f32 %v351_v6, %v384_v35  ;;  %v410_v40 = vsel %vm72_vm0, %v398_v36, 0.0  ;;  %v407_v41 = vsel %vm72_vm0, %v397_v37, 0.0  ;;  %1492 = vmatpush3.bf16.msra.mxu0 %v1489_v63  ;;  %v462_v0 = vld [vmem:[#allocation5 + $0x10] sm:$0xff] }
 0x27e   :  { %v372_v42 = vpop.xlane.xlu1 %371  ;;  %411 = vadd.xlane.f32.xlu0 %v410_v40  ;;  %408 = vadd.xlane.f32.xlu1 %v407_v41  ;;  %v375_v43 = vpop.xlane.xlu0 %374  ;;  %v1493_v2 = vpack.c.bf16 %v463_v1, %v462_v0 }
 0x27f   :  { %v385_v44 = vmul.f32 0.03125, %v372_v42  ;;  %v386_v45 = vmul.f32 0.03125, %v375_v43  ;;  %v399_v46 = vmul.f32 %v1797_v38, %v1797_v38  ;;  %v400_v47 = vmul.f32 %v1799_v39, %v1799_v39 }
 0x280   :  { %1494 = vmatprep.subr.bf16.mxu0 %v1493_v2 }
 0x281   :  { %v1807_v48 = vsub.f32 %v352_v10, %v385_v44  ;;  %v1809_v49 = vsub.f32 %v353_v14, %v386_v45  ;;  %v413_v50 = vsel %vm72_vm0, %v399_v46, 0.0  ;;  %v416_v51 = vsel %vm72_vm0, %v400_v47, 0.0  ;;  %1496 = vmatpush3.bf16.msra.mxu0 %v1493_v2 }
 0x282   :  { %v378_v52 = vpop.xlane.xlu1 %377  ;;  %414 = vadd.xlane.f32.xlu1 %v413_v50  ;;  %417 = vadd.xlane.f32.xlu0 %v416_v51  ;;  %v466_v47 = vsub.s32 2, %v1757_v21 }
 0x283   :  { %v387_v53 = vmul.f32 0.03125, %v378_v52  ;;  %v401_v54 = vmul.f32 %v1807_v48, %v1807_v48  ;;  %v402_v55 = vmul.f32 %v1809_v49, %v1809_v49 }
 0x285   :  { %v1817_v56 = vsub.f32 %v354_v15, %v387_v53  ;;  %v419_v57 = vsel %vm72_vm0, %v401_v54, 0.0  ;;  %v422_v58 = vsel %vm72_vm0, %v402_v55, 0.0 }
 0x286   :  { %420 = vadd.xlane.f32.xlu1 %v419_v57  ;;  %423 = vadd.xlane.f32.xlu0 %v422_v58 }
 0x287   :  { %v403_v59 = vmul.f32 %v1817_v56, %v1817_v56 }
 0x289   :  { %v425_v60 = vsel %vm72_vm0, %v403_v59, 0.0 }
 0x28a   :  { %426 = vadd.xlane.f32.xlu1 %v425_v60 }
 0x307   :  { %v406_v3 = vpop.xlane.xlu0 %405 }
 0x308   :  { %v428_v4 = vmul.f32 0.03125, %v406_v3 }
 0x30a   :  { %v436_v5 = vadd.f32 1e-05, %v428_v4 }
 0x30b   :  { %v409_v6 = vpop.xlane.xlu1 %408  ;;  %v412_v7 = vpop.xlane.xlu0 %411 }
 0x30c   :  { %1519 = vrsqrt.f32 %v436_v5  ;;  %v429_v8 = vmul.f32 0.03125, %v409_v6  ;;  %v430_v9 = vmul.f32 0.03125, %v412_v7 }
 0x30e   :  { %v437_v10 = vadd.f32 1e-05, %v429_v8  ;;  %v438_v11 = vadd.f32 1e-05, %v430_v9 }
 0x30f   :  { %v415_v12 = vpop.xlane.xlu1 %414  ;;  %v418_v13 = vpop.xlane.xlu0 %417 }
 0x310   :  { %1521 = vrsqrt.f32 %v437_v10  ;;  %v431_v14 = vmul.f32 0.03125, %v415_v12  ;;  %v432_v15 = vmul.f32 0.03125, %v418_v13 }
 0x311   :  { %1523 = vrsqrt.f32 %v438_v11 }
 0x312   :  { %v439_v16 = vadd.f32 1e-05, %v431_v14  ;;  %v440_v17 = vadd.f32 1e-05, %v432_v15 }
 0x313   :  { %v421_v18 = vpop.xlane.xlu1 %420  ;;  %v424_v19 = vpop.xlane.xlu0 %423 }
 0x314   :  { %1525 = vrsqrt.f32 %v439_v16  ;;  %v433_v20 = vmul.f32 0.03125, %v421_v18  ;;  %v434_v24 = vmul.f32 0.03125, %v424_v19 }
 0x315   :  { %1527 = vrsqrt.f32 %v440_v17 }
 0x316   :  { %v1520_v25 = vpop.eup %1519  ;;  %v441_v26 = vadd.f32 1e-05, %v433_v20  ;;  %v442_v27 = vadd.f32 1e-05, %v434_v24 }
 0x317   :  { %v427_v28 = vpop.xlane.xlu1 %426  ;;  %v452_v31 = vmul.f32 %v1520_v25, %v1784_v22 }
 0x318   :  { %1529 = vrsqrt.f32 %v441_v26  ;;  %v435_v32 = vmul.f32 0.03125, %v427_v28 }
 0x319   :  { %1531 = vrsqrt.f32 %v442_v27  ;;  %1416 = vmatprep.mubr.msk.f32.mxu0 %vm72_vm0, %v452_v31 }
 0x31a   :  { %v1522_v33 = vpop.eup %1521  ;;  %v443_v34 = vadd.f32 1e-05, %v435_v32 }
 0x31b   :  { %v1524_v35 = vpop.eup %1523  ;;  %v453_v36 = vmul.f32 %v1522_v33, %v1790_v30 }
 0x31c   :  { %1533 = vrsqrt.f32 %v443_v34  ;;  %v454_v37 = vmul.f32 %v1524_v35, %v1788_v29 }
 0x31d   :  { %1417 = vmatmul.mubr.msk.f32.vlgmr.msra.gmra.mrb[8].mxu0 %vm72_vm0, %v453_v36 }
 0x31e   :  { %v1526_v40 = vpop.eup %1525  ;;  %1419 = vmatprep.mubr.msk.f32.mxu0 %vm72_vm0, %v454_v37 }
 0x31f   :  { %v1528_v41 = vpop.eup %1527  ;;  %v455_v22 = vmul.f32 %v1526_v40, %v1797_v38  ;;  %v734_v38 = vld [vmem:[%s1996_s5] sm:$0xf] }
 0x320   :  { %v456_v42 = vmul.f32 %v1528_v41, %v1799_v39  ;;  %1428 = vmatprep.subr.msk.mxu1 %vm759_vm1, %v734_v38  ;;  %v1644_v39 = vmov 0.0  }
 0x321   :  { %1420 = vmatmul.mubr.msk.f32.gmra.mrb[10].mxu0 %vm72_vm0, %v455_v22  ;;  %1429 = vmatpush3.msk.msra.mxu1 %vm759_vm1, %v734_v38 }
 0x322   :  { %v1530_v43 = vpop.eup %1529  ;;  %1422 = vmatprep.mubr.msk.f32.mxu0 %vm72_vm0, %v456_v42  ;;  %1442 = vmatprep.subr.mxu0 %v1644_v39 }
 0x323   :  { %v1532_v44 = vpop.eup %1531  ;;  %v457_v30 = vmul.f32 %v1530_v43, %v1807_v48  ;;  %1443 = vmatpush3.msk.msra.mxu0 %vm759_vm1, %v734_v38  ;;  %v467_v48 = vrot.slane %v1763_v23, %v466_v47 }
 0x324   :  { %v458_v29 = vmul.f32 %v1532_v44, %v1809_v49  ;;  %1468 = vmatprep.subr.mxu0 %v1644_v39 }
 0x325   :  { %1423 = vmatmul.mubr.msk.f32.gmra.mrb[12].mxu0 %vm72_vm0, %v457_v30 }
 0x326   :  { %v1534_v45 = vpop.eup %1533  ;;  %1425 = vmatprep.mubr.msk.f32.mxu0 %vm72_vm0, %v458_v29 }
 0x327   :  { %v459_v46 = vmul.f32 %v1534_v45, %v1817_v56 }
 0x329   :  { %1426 = vmatmul.mubr.msk.f32.gmra.mrb[14].mxu0 %vm72_vm0, %v459_v46 }
 0x32a   :  { %1444 = vmatprep.mubr.msk.f32.mxu0 %vm1645_vm2, %v1644_v39 }
 0x3f0   :  { %v1418_v49 = vpop.f32.mrb[8].mxu0 }
 0x3f1   :  { %v1852_v50 = vadd.f32 %v1418_v49, %v467_v48  ;;  %v558_v51 = vpop.f32.mrb[9].mxu0 }
 0x3f2   :  { %v1854_v52 = vadd.f32 %v558_v51, %v467_v48 }
 0x3f3   :  { %v605_v53 = vsel %vm597_vm3, %v1852_v50, -inf }
 0x3f4   :  { %v606_v54 = vrot.slane %v605_v53, 4  ;;  %v598_v55 = vsel %vm597_vm3, %v1854_v52, -inf  ;;  %v1421_v56 = vpop.f32.mrb[10].mxu0 }
 0x3f5   :  { %v599_v57 = vrot.slane %v598_v55, 4  ;;  %v1860_v58 = vadd.f32 %v1421_v56, %v467_v48  ;;  %v568_v59 = vpop.f32.mrb[11].mxu0 }
 0x3f6   :  { %v607_v23 = vmax.f32 %v605_v53, %v606_v54  ;;  %v1862_v60 = vadd.f32 %v568_v59, %v467_v48 }
 0x3f7   :  { %v600_v61 = vmax.f32 %v598_v55, %v599_v57  ;;  %v619_v62 = vsel %vm597_vm3, %v1860_v58, -inf }
 0x3f8   :  { %v608_v63 = vrot.slane %v607_v23, 2  ;;  %v620_v0 = vrot.slane %v619_v62, 4  ;;  %v612_v1 = vsel %vm597_vm3, %v1862_v60, -inf  ;;  %v1424_v2 = vpop.f32.mrb[12].mxu0 }
 0x3f9   :  { %v601_v3 = vrot.slane %v600_v61, 2  ;;  %v613_v4 = vrot.slane %v612_v1, 4  ;;  %v1868_v5 = vadd.f32 %v1424_v2, %v467_v48  ;;  %v578_v6 = vpop.f32.mrb[13].mxu0 }
 0x3fa   :  { %v609_v7 = vmax.f32 %v607_v23, %v608_v63  ;;  %v621_v8 = vmax.f32 %v619_v62, %v620_v0  ;;  %v1870_v9 = vadd.f32 %v578_v6, %v467_v48 }
 0x3fb   :  { %v602_v10 = vmax.f32 %v600_v61, %v601_v3  ;;  %v614_v11 = vmax.f32 %v612_v1, %v613_v4  ;;  %v633_v12 = vsel %vm597_vm3, %v1868_v5, -inf }
 0x3fc   :  { %v610_v13 = vrot.slane %v609_v7, 1  ;;  %v622_v14 = vrot.slane %v621_v8, 2  ;;  %v634_v15 = vrot.slane %v633_v12, 4  ;;  %v626_v16 = vsel %vm597_vm3, %v1870_v9, -inf  ;;  %v1427_v17 = vpop.f32.mrb[14].mxu0 }
 0x3fd   :  { %v603_v18 = vrot.slane %v602_v10, 1  ;;  %v615_v19 = vrot.slane %v614_v11, 2  ;;  %v627_v20 = vrot.slane %v626_v16, 4  ;;  %v1876_v24 = vadd.f32 %v1427_v17, %v467_v48  ;;  %v588_v25 = vpop.f32.mrb[15].mxu0 }
 0x3fe   :  { %v611_v26 = vmax.f32 %v609_v7, %v610_v13  ;;  %v623_v27 = vmax.f32 %v621_v8, %v622_v14  ;;  %v635_v28 = vmax.f32 %v633_v12, %v634_v15  ;;  %v1878_v31 = vadd.f32 %v588_v25, %v467_v48 }
 0x3ff   :  { %v604_v32 = vmax.f32 %v602_v10, %v603_v18  ;;  %v616_v33 = vmax.f32 %v614_v11, %v615_v19  ;;  %v628_v34 = vmax.f32 %v626_v16, %v627_v20  ;;  %v647_v35 = vsel %vm597_vm3, %v1876_v24, -inf }
 0x400   :  { %v655_v36 = vsub.f32 %v1852_v50, %v611_v26  ;;  %v624_v37 = vrot.slane %v623_v27, 1  ;;  %v636_v40 = vrot.slane %v635_v28, 2  ;;  %v648_v41 = vrot.slane %v647_v35, 4 }
 0x401   :  { %v654_v22 = vsub.f32 %v1854_v52, %v604_v32  ;;  %v617_v42 = vrot.slane %v616_v33, 1  ;;  %v629_v43 = vrot.slane %v628_v34, 2  ;;  %v640_v44 = vsel %vm597_vm3, %v1878_v31, -inf }
 0x402   :  { %v664_v30 = vmul.f32 1.442695, %v655_v36  ;;  %v625_v29 = vmax.f32 %v623_v27, %v624_v37  ;;  %v637_v45 = vmax.f32 %v635_v28, %v636_v40  ;;  %v649_v46 = vmax.f32 %v647_v35, %v648_v41 }
 0x403   :  { %v662_v38 = vmul.f32 1.442695, %v654_v22  ;;  %v618_v47 = vmax.f32 %v616_v33, %v617_v42  ;;  %v630_v48 = vmax.f32 %v628_v34, %v629_v43  ;;  %v641_v49 = vrot.slane %v640_v44, 4 }
 0x404   :  { %1535 = vpow2.f32 %v664_v30  ;;  %v657_v51 = vsub.f32 %v1860_v58, %v625_v29  ;;  %v638_v53 = vrot.slane %v637_v45, 1  ;;  %v650_v54 = vrot.slane %v649_v46, 2 }
 0x405   :  { %1537 = vpow2.f32 %v662_v38  ;;  %v656_v55 = vsub.f32 %v1862_v60, %v618_v47  ;;  %v631_v56 = vrot.slane %v630_v48, 1  ;;  %v642_v57 = vmax.f32 %v640_v44, %v641_v49 }
 0x406   :  { %v668_v59 = vmul.f32 1.442695, %v657_v51  ;;  %v639_v23 = vmax.f32 %v637_v45, %v638_v53  ;;  %v651_v61 = vmax.f32 %v649_v46, %v650_v54 }
 0x407   :  { %v666_v62 = vmul.f32 1.442695, %v656_v55  ;;  %v632_v63 = vmax.f32 %v630_v48, %v631_v56  ;;  %v643_v0 = vrot.slane %v642_v57, 2 }
 0x408   :  { %1539 = vpow2.f32 %v668_v59  ;;  %v659_v1 = vsub.f32 %v1868_v5, %v639_v23  ;;  %v652_v2 = vrot.slane %v651_v61, 1 }
 0x409   :  { %1541 = vpow2.f32 %v666_v62  ;;  %v658_v3 = vsub.f32 %v1870_v9, %v632_v63  ;;  %v644_v4 = vmax.f32 %v642_v57, %v643_v0 }
 0x40a   :  { %v672_v6 = vmul.f32 1.442695, %v659_v1  ;;  %v653_v7 = vmax.f32 %v651_v61, %v652_v2 }
 0x40b   :  { %v670_v8 = vmul.f32 1.442695, %v658_v3  ;;  %v645_v10 = vrot.slane %v644_v4, 1 }
 0x40c   :  { %1543 = vpow2.f32 %v672_v6  ;;  %v661_v11 = vsub.f32 %v1876_v24, %v653_v7 }
 0x40d   :  { %1545 = vpow2.f32 %v670_v8  ;;  %v646_v12 = vmax.f32 %v644_v4, %v645_v10 }
 0x40e   :  { %v1536_v13 = vpop.eup %1535  ;;  %v676_v14 = vmul.f32 1.442695, %v661_v11 }
 0x40f   :  { %v1538_v15 = vpop.eup %1537  ;;  %v685_v16 = vsel %vm597_vm3, %v1536_v13, 0.0  ;;  %v660_v17 = vsub.f32 %v1878_v31, %v646_v12 }
 0x410   :  { %v686_v18 = vrot.slane %v685_v16, 4  ;;  %v678_v19 = vsel %vm597_vm3, %v1538_v15, 0.0  ;;  %1547 = vpow2.f32 %v676_v14  ;;  %1430 = vmatprep.mubr.msk.f32.mxu1 %vm597_vm3, %v1538_v15 }
 0x411   :  { %v679_v20 = vrot.slane %v678_v19, 4  ;;  %v674_v25 = vmul.f32 1.442695, %v660_v17  ;;  %1431 = vmatmul.mubr.msk.f32.vlgmr.msra.gmra.mrb[8].mxu1 %vm597_vm3, %v1536_v13 }
 0x412   :  { %v1540_v26 = vpop.eup %1539  ;;  %v687_v27 = vadd.f32 %v686_v18, %v685_v16 }
 0x413   :  { %v1542_v28 = vpop.eup %1541  ;;  %v680_v32 = vadd.f32 %v679_v20, %v678_v19  ;;  %v699_v33 = vsel %vm597_vm3, %v1540_v26, 0.0  ;;  %1549 = vpow2.f32 %v674_v25 }
 0x414   :  { %v688_v34 = vrot.slane %v687_v27, 2  ;;  %v700_v35 = vrot.slane %v699_v33, 4  ;;  %v692_v36 = vsel %vm597_vm3, %v1542_v28, 0.0  ;;  %1433 = vmatprep.mubr.msk.f32.mxu1 %vm597_vm3, %v1542_v28 }
 0x415   :  { %v681_v37 = vrot.slane %v680_v32, 2  ;;  %v693_v40 = vrot.slane %v692_v36, 4  ;;  %1434 = vmatmul.mubr.msk.f32.gmra.mrb[10].mxu1 %vm597_vm3, %v1540_v26 }
 0x416   :  { %v1544_v41 = vpop.eup %1543  ;;  %v689_v22 = vadd.f32 %v688_v34, %v687_v27  ;;  %v701_v42 = vadd.f32 %v700_v35, %v699_v33 }
 0x417   :  { %v1546_v43 = vpop.eup %1545  ;;  %v682_v44 = vadd.f32 %v681_v37, %v680_v32  ;;  %v694_v30 = vadd.f32 %v693_v40, %v692_v36  ;;  %v713_v29 = vsel %vm597_vm3, %v1544_v41, 0.0 }
 0x418   :  { %v690_v45 = vrot.slane %v689_v22, 1  ;;  %v702_v46 = vrot.slane %v701_v42, 2  ;;  %v714_v38 = vrot.slane %v713_v29, 4  ;;  %v706_v47 = vsel %vm597_vm3, %v1546_v43, 0.0  ;;  %1436 = vmatprep.mubr.msk.f32.mxu1 %vm597_vm3, %v1546_v43 }
 0x419   :  { %v683_v48 = vrot.slane %v682_v44, 1  ;;  %v695_v49 = vrot.slane %v694_v30, 2  ;;  %v707_v51 = vrot.slane %v706_v47, 4  ;;  %1437 = vmatmul.mubr.msk.f32.gmra.mrb[12].mxu1 %vm597_vm3, %v1544_v41 }
 0x41a   :  { %v1548_v53 = vpop.eup %1547  ;;  %v703_v54 = vadd.f32 %v702_v46, %v701_v42  ;;  %v715_v55 = vadd.f32 %v714_v38, %v713_v29  ;;  %v691_v56 = vadd.f32 %v690_v45, %v689_v22  ;;  %v1059_v38 = vld [vmem:[%s1995_s4] sm:$0xff] }
 0x41b   :  { %v696_v57 = vadd.f32 %v695_v49, %v694_v30  ;;  %v708_v59 = vadd.f32 %v707_v51, %v706_v47  ;;  %v727_v23 = vsel %vm597_vm3, %v1548_v53, 0.0  ;;  %v684_v61 = vadd.f32 %v683_v48, %v682_v44  ;;  %v1060_v47 = vld [vmem:[%s1995_s4 + $0x8] sm:$0xff]  ;;  %v1061_v51 = vld [vmem:[%s1995_s4 + $0x10] sm:$0xff] }
 0x41c   :  { %v716_v62 = vrot.slane %v715_v55, 2  ;;  %v728_v63 = vrot.slane %v727_v23, 4  ;;  %v704_v3 = vrot.slane %v703_v54, 1  ;;  %1551 = vrcp.f32 %v691_v56  ;;  %v1064_v56 = vld [vmem:[%s1995_s4 + $0x28] sm:$0xff] }
 0x41d   :  { %v1550_v0 = vpop.eup %1549  ;;  %v697_v1 = vrot.slane %v696_v57, 1  ;;  %v709_v2 = vrot.slane %v708_v59, 2  ;;  %1553 = vrcp.f32 %v684_v61  ;;  %v1646_v48 = vmov 0.0|0.0  }
 0x41e   :  { %v717_v4 = vadd.f32 %v716_v62, %v715_v55  ;;  %v729_v6 = vadd.f32 %v728_v63, %v727_v23  ;;  %v720_v7 = vsel %vm597_vm3, %v1550_v0, 0.0  ;;  %1439 = vmatprep.mubr.msk.f32.mxu1 %vm597_vm3, %v1550_v0  ;;  %v705_v15 = vadd.f32 %v704_v3, %v703_v54  ;;  %1497 = vmatprep.subr.bf16.mxu1 %v1646_v48  ;;  %v1063_v55 = vld [vmem:[%s1995_s4 + $0x20] sm:$0xff]  ;;  %v1066_v23 = vld [vmem:[%s1995_s4 + $0x38] sm:$0xff] }
 0x41f   :  { %v698_v8 = vadd.f32 %v697_v1, %v696_v57  ;;  %v710_v10 = vadd.f32 %v709_v2, %v708_v59  ;;  %v721_v11 = vrot.slane %v720_v7, 4  ;;  %1440 = vmatmul.mubr.msk.f32.gmra.mrb[14].mxu1 %vm597_vm3, %v1548_v53  ;;  %v1498_v49 = vpack.c.bf16 %v1060_v47, %v1059_v38  ;;  %v1062_v53 = vld [vmem:[%s1995_s4 + $0x18] sm:$0xff]  ;;  %v1065_v59 = vld [vmem:[%s1995_s4 + $0x30] sm:$0xff]  ;;  %v1067_v62 = vld [vmem:[%s1995_s4 + $0x40] sm:$0xf] }
 0x420   :  { %v730_v12 = vrot.slane %v729_v6, 2  ;;  %1465 = vmatprep.mubr.msk.f32.mxu1 %vm1645_vm2, %v1644_v39  ;;  %v718_v16 = vrot.slane %v717_v4, 1  ;;  %v1501_v54 = vpack.c.bf16 %v1062_v53, %v1061_v51  ;;  %v1504_v57 = vpack.c.bf16 %v1064_v56, %v1063_v55 }
 0x421   :  { %1555 = vrcp.f32 %v698_v8  ;;  %v711_v13 = vrot.slane %v710_v10, 1  ;;  %v722_v14 = vadd.f32 %v721_v11, %v720_v7  ;;  %1499 = vmatpush3.bf16.msra.mxu1 %v1498_v49  ;;  %v1507_v61 = vpack.c.bf16 %v1066_v23, %v1065_v59 }
 0x422   :  { %v731_v17 = vadd.f32 %v730_v12, %v729_v6  ;;  %v719_v26 = vadd.f32 %v718_v16, %v717_v4  ;;  %1500 = vmatprep.subr.bf16.mxu1 %v1646_v48 }
 0x423   :  { %v712_v18 = vadd.f32 %v711_v13, %v710_v10  ;;  %v723_v19 = vrot.slane %v722_v14, 2 }
 0x424   :  { %v732_v20 = vrot.slane %v731_v17, 1 }
 0x425   :  { %1557 = vrcp.f32 %v712_v18  ;;  %v724_v25 = vadd.f32 %v723_v19, %v722_v14  ;;  %1502 = vmatpush3.bf16.msra.mxu1 %v1501_v54 }
 0x426   :  { %1559 = vrcp.f32 %v705_v15  ;;  %v733_v28 = vadd.f32 %v732_v20, %v731_v17  ;;  %v1552_v32 = vpop.eup %1551  ;;  %1503 = vmatprep.subr.bf16.mxu1 %v1646_v48 }
 0x427   :  { %v725_v27 = vrot.slane %v724_v25, 1  ;;  %v1554_v34 = vpop.eup %1553  ;;  %1561 = vrcp.f32 %v719_v26 }
 0x428   :  { %v950_v36 = vsel %vm949_vm4, %v1552_v32, %v1554_v34 }
 0x429   :  { %v726_v33 = vadd.f32 %v725_v27, %v724_v25  ;;  %1505 = vmatpush3.bf16.msra.mxu1 %v1504_v57 }
 0x42a   :  { %1506 = vmatprep.subr.bf16.mxu1 %v1646_v48 }
 0x42b   :  { %v1556_v35 = vpop.eup %1555  ;;  %1563 = vrcp.f32 %v726_v33 }
 0x42c   :  { %1565 = vrcp.f32 %v733_v28  ;;  %v952_v37 = vsel %vm951_vm5, %v1556_v35, %v950_v36 }
 0x42d   :  { %1508 = vmatpush3.bf16.msra.mxu1 %v1507_v61 }
 0x42e   :  { %1463 = vmatprep.subr.mxu1 %v1644_v39 }
 0x42f   :  { %v1558_v40 = vpop.eup %1557 }
 0x430   :  { %v1560_v41 = vpop.eup %1559 }
 0x431   :  { %v954_v22 = vsel %vm953_vm6, %v1560_v41, %v952_v37  ;;  %v1562_v43 = vpop.eup %1561  ;;  %1464 = vmatpush3.msk.msra.mxu1 %vm759_vm1, %v1067_v62 }
 0x432   :  { %v956_v42 = vsel %vm955_vm7, %v1558_v40, %v954_v22 }
 0x433   :  { %v958_v30 = vsel %vm957_vm8, %v1562_v43, %v956_v42 }
 0x435   :  { %v1564_v44 = vpop.eup %1563 }
 0x436   :  { %v1566_v29 = vpop.eup %1565  ;;  %v960_v45 = vsel %vm959_vm9, %v1564_v44, %v958_v30 }
 0x437   :  { %v962_v46 = vsel %vm961_vm10, %v1566_v29, %v960_v45 }
 0x438   :  { %1445 = vmatmul.mubr.msk.f32.vlgmr.msra.gmra.mrb[16].mxu0 %vm597_vm3, %v962_v46 }
 0x439   :  { %1470 = vmatprep.mubr.msk.f32.mxu0 %vm1645_vm2, %v1644_v39 }
 0x4e4   :  { %v1432_v63 = vpop.f32.mrb[8].mxu1 }
 0x4e5   :  { %v829_v0 = vpop.f32.mrb[9].mxu1  ;;  %v869_v6 = vmul.f32 %v1432_v63, %v1852_v50 }
 0x4e6   :  { %v868_v7 = vmul.f32 %v829_v0, %v1854_v52 }
 0x4e7   :  { %v884_v12 = vsel %vm876_vm11, %v869_v6, 0.0 }
 0x4e8   :  { %v1435_v1 = vpop.f32.mrb[10].mxu1  ;;  %v877_v14 = vsel %vm876_vm11, %v868_v7, 0.0  ;;  %v885_v17 = vrot.slane %v884_v12, 4 }
 0x4e9   :  { %v839_v2 = vpop.f32.mrb[11].mxu1  ;;  %v871_v8 = vmul.f32 %v1435_v1, %v1860_v58  ;;  %v878_v18 = vrot.slane %v877_v14, 4 }
 0x4ea   :  { %v870_v39 = vmul.f32 %v839_v2, %v1862_v60 }
 0x4eb   :  { %v898_v15 = vsel %vm876_vm11, %v871_v8, 0.0  ;;  %v879_v33 = vadd.f32 %v878_v18, %v877_v14 }
 0x4ec   :  { %v1438_v3 = vpop.f32.mrb[12].mxu1  ;;  %v891_v50 = vsel %vm876_vm11, %v870_v39, 0.0  ;;  %v899_v19 = vrot.slane %v898_v15, 4 }
 0x4ed   :  { %v849_v4 = vpop.f32.mrb[13].mxu1  ;;  %v873_v10 = vmul.f32 %v1438_v3, %v1868_v5  ;;  %v892_v20 = vrot.slane %v891_v50, 4  ;;  %v880_v22 = vrot.slane %v879_v33, 2 }
 0x4ee   :  { %v872_v11 = vmul.f32 %v849_v4, %v1870_v9  ;;  %v900_v34 = vadd.f32 %v899_v19, %v898_v15 }
 0x4ef   :  { %v912_v58 = vsel %vm876_vm11, %v873_v10, 0.0  ;;  %v893_v35 = vadd.f32 %v892_v20, %v891_v50  ;;  %v881_v38 = vadd.f32 %v880_v22, %v879_v33  ;;  %v1567_v22 = vld [vmem:[%s1997_s6] sm:$0x3f]  ;;  %s1612_s6 = scalar_lea.vmem %s1261_s21, 16 }
 0x4f0   :  { %v905_v60 = vsel %vm876_vm11, %v872_v11, 0.0  ;;  %v913_v26 = vrot.slane %v912_v58, 4  ;;  %v901_v42 = vrot.slane %v900_v34, 2  ;;  %p1613_p2 = scmp.ne.s32.totalorder %s1261_s21, %s1612_s6  ;;  %p1618_p4 = scmp.lt.s32.totalorder %s1616_s22, %s1612_s6 }
 0x4f1   :  { %v906_v27 = vrot.slane %v905_v60, 4  ;;  %v894_v43 = vrot.slane %v893_v35, 2  ;;  %v882_v56 = vrot.slane %v881_v38, 1 }
 0x4f2   :  { %v1441_v13 = vpop.f32.mrb[14].mxu1  ;;  %v914_v36 = vadd.f32 %v913_v26, %v912_v58  ;;  %v902_v47 = vadd.f32 %v901_v42, %v900_v34  ;;  %v1070_v42 = vsub.s32 3, %v1757_v21  ;;  %p1619_p5 = por %p1618_p4, %p1617_p3 }
 0x4f3   :  { %v875_v16 = vmul.f32 %v1441_v13, %v1876_v24  ;;  %v859_v52 = vpop.f32.mrb[15].mxu1  ;;  %v886_v24 = vadd.f32 %v885_v17, %v884_v12  ;;  %v907_v37 = vadd.f32 %v906_v27, %v905_v60  ;;  %v895_v48 = vadd.f32 %v894_v43, %v893_v35 }
 0x4f4   :  { %v874_v5 = vmul.f32 %v859_v52, %v1878_v31  ;;  %v915_v44 = vrot.slane %v914_v36, 2  ;;  %v903_v57 = vrot.slane %v902_v47, 1  ;;  %v883_v1 = vadd.f32 %v882_v56, %v881_v38  ;;  %p1620_p6 = pnand %p1619_p5, %p1613_p2 }
 0x4f5   :  { %v926_v9 = vsel %vm876_vm11, %v875_v16, 0.0  ;;  %v887_v41 = vrot.slane %v886_v24, 2  ;;  %v908_v30 = vrot.slane %v907_v37, 2  ;;  %v896_v59 = vrot.slane %v895_v48, 1 }
 0x4f6   :  { %v919_v25 = vsel %vm876_vm11, %v874_v5, 0.0  ;;  %v927_v28 = vrot.slane %v926_v9, 4  ;;  %v916_v49 = vadd.f32 %v915_v44, %v914_v36  ;;  %v904_v2 = vadd.f32 %v903_v57, %v902_v47 }
 0x4f7   :  { %v920_v32 = vrot.slane %v919_v25, 4  ;;  %v888_v46 = vadd.f32 %v887_v41, %v886_v24  ;;  %v909_v51 = vadd.f32 %v908_v30, %v907_v37  ;;  %v897_v3 = vadd.f32 %v896_v59, %v895_v48 }
 0x4f8   :  { %v928_v40 = vadd.f32 %v927_v28, %v926_v9  ;;  %v917_v23 = vrot.slane %v916_v49, 1  ;;  %v1647_v41 = vmov 0   ;;  %v1071_v43 = vrot.slane %v1567_v22, %v1070_v42 }
 0x4f9   :  { %v921_v31 = vadd.f32 %v920_v32, %v919_v25  ;;  %v889_v55 = vrot.slane %v888_v46, 1  ;;  %v910_v61 = vrot.slane %v909_v51, 1  ;;  %1518 = vset.pattern.permute.xlu0 %v1647_v41 }
 0x4fa   :  { %v929_v29 = vrot.slane %v928_v40, 2  ;;  %v918_v4 = vadd.f32 %v917_v23, %v916_v49  ;;  %1172 = vperm.xlu0 %1518, %v1567_v22  }
 0x4fb   :  { %v922_v45 = vrot.slane %v921_v31, 2  ;;  %v890_v0 = vadd.f32 %v889_v55, %v888_v46  ;;  %v911_v6 = vadd.f32 %v910_v61, %v909_v51  ;;  %v1174_v46 = vrot.slane %v1567_v22, 4 }
 0x4fc   :  { %v930_v53 = vadd.f32 %v929_v29, %v928_v40 }
 0x4fd   :  { %v923_v54 = vadd.f32 %v922_v45, %v921_v31 }
 0x4fe   :  { %v931_v62 = vrot.slane %v930_v53, 1 }
 0x4ff   :  { %v924_v63 = vrot.slane %v923_v54, 1 }
 0x500   :  { %v932_v7 = vadd.f32 %v931_v62, %v930_v53 }
 0x501   :  { %v925_v8 = vadd.f32 %v924_v63, %v923_v54 }
 0x50b   :  { %v1031_v39 = vpop.f32.mrb[16].mxu0 }
 0x50c   :  { %v1036_v10 = vrot.slane %v1031_v39, 1  ;;  %v1037_v11 = vrot.slane %v1031_v39, 2  ;;  %v1038_v12 = vrot.slane %v1031_v39, 3  ;;  %v1039_v13 = vrot.slane %v1031_v39, 4  ;;  %v1446_v14 = vpop.f32.mrb[17].mxu0 }
 0x50d   :  { %v1040_v15 = vrot.slane %v1031_v39, 5  ;;  %v1051_v50 = vmul.f32 %v1031_v39, %v883_v1  ;;  %v1041_v16 = vrot.slane %v1031_v39, 6  ;;  %v1042_v52 = vrot.slane %v1031_v39, 7 }
 0x50e   :  { %v1052_v58 = vmul.f32 %v1036_v10, %v890_v0  ;;  %v1053_v60 = vmul.f32 %v1037_v11, %v897_v3  ;;  %v1054_v5 = vmul.f32 %v1038_v12, %v904_v2  ;;  %v1055_v17 = vmul.f32 %v1039_v13, %v911_v6 }
 0x50f   :  { %v1056_v9 = vmul.f32 %v1040_v15, %v918_v4  ;;  %v1057_v18 = vmul.f32 %v1041_v16, %v925_v8  ;;  %v1058_v19 = vmul.f32 %v1042_v52, %v932_v7 }
 0x510   :  { %v1080_v20 = vrot.slane %v1052_v58, 7  ;;  %v1082_v25 = vrot.slane %v1053_v60, 6  ;;  %v1084_v27 = vrot.slane %v1054_v5, 5  ;;  %v1086_v32 = vrot.slane %v1055_v17, 4 }
 0x511   :  { %v1088_v33 = vrot.slane %v1056_v9, 3  ;;  %v1090_v35 = vrot.slane %v1057_v18, 2  ;;  %v1092_v37 = vrot.slane %v1058_v19, 1 }
 0x512   :  { %v1081_v26 = vsel %vm949_vm4, %v1080_v20, %v1051_v50 }
 0x513   :  { %v1083_v28 = vsel %vm951_vm5, %v1082_v25, %v1081_v26 }
 0x514   :  { %v1085_v24 = vsel %vm953_vm6, %v1084_v27, %v1083_v28 }
 0x515   :  { %v1087_v34 = vsel %vm955_vm7, %v1086_v32, %v1085_v24 }
 0x516   :  { %v1089_v36 = vsel %vm957_vm8, %v1088_v33, %v1087_v34 }
 0x517   :  { %v1091_v40 = vsel %vm959_vm9, %v1090_v35, %v1089_v36 }
 0x518   :  { %v1093_v31 = vsel %vm961_vm10, %v1092_v37, %v1091_v40 }
 0x519   :  { %1466 = vmatmul.mubr.msk.f32.vlgmr.msra.gmra.mrb[16].mxu1 %vm876_vm11, %v1093_v31 }
 0x579   :  { %v1173_v38 = vpop.permute.xlu0 %1172 }
 0x57a   :  { %v1175_v47 = vrot.slane %v1173_v38, 5 }
 0x5ec   :  { %v1165_v44 = vpop.f32.mrb[16].mxu1 }
 0x5ed   :  { %v1166_v30 = vadd.f32 %v1165_v44, %v1071_v43  ;;  %v1467_v29 = vpop.f32.mrb[17].mxu1 }
 0x5ef   :  { %v1169_v45 = vmax.f32 %v1166_v30, 0.0 }
 0x5f1   :  { %1469 = vmatpush3.xpose.msk.msra.mxu0 %vm72_vm0, %v1169_v45 }
 0x5f4   :  { %1471 = vmatmul.mubr.msk.f32.vlgmr.msra.gmra.mrb[18].mxu0 %vm72_vm0, %v1174_v46 }
 0x6c7   :  { %v1248_v48 = vpop.f32.mrb[18].mxu0 }
 0x6c8   :  { %v1249_v49 = vadd.f32 %v1248_v48, %v1175_v47  ;;  %v1472_v51 = vpop.f32.mrb[19].mxu0 }
 0x6ca   :  { %1253 = vst.msk [vmem:[#allocation7] sm:$0x1] %vm1252_vm12, %v1249_v49 }
 0x6cb   :  { %1623 = shalt.err (!%p1620_p6)
}
 0x6cc   :  { %s1624_s2 = scalar_lea.hbm %s1998_s7, 16 }
 0x6cd   :  { %p1625_p7 = scmp.ne.s32.totalorder %s1998_s7, %s1624_s2  ;;  %p1628_p8 = scmp.lt.u32.totalorder %s1624_s2, %s1998_s7 }
 0x6cf   :  { %p1630_p9 = pnand %p1628_p8, %p1625_p7 }
 0x6d1   :  { %1633 = shalt.err (!%p1630_p9)
}
 0x6d2   :  { %1263 = dma.vmem_to_hbm [thread:$0]  %s1261_s21, 16, %s1998_s7, [#allocation4]  }
 0x6d3   :  { %1638 = dma.done.wait [#allocation4], 16  }
 0x6d4   :  { %1639 = vsyncadd [#allocation4], 4294967280 }
 0x6d5   :  { %1267 = vsyncpa [#allocation3], 1 }
 0x6d6   :  { %1268 = vsyncpa [#allocation6], 1 }
 0x6d7   :  { %1269 = vsyncpa [#allocation4], 1 }

</bundles_post_ra>
